<compile_context>
chip_gen: v7x
topology: tpu7x:2x2x1
jax: 0.10.0
libtpu: 0.0.40
codegen_flags: <defaults>
</compile_context>

<pallas_src>
import jax
import jax.numpy as jnp
from jax.experimental import pallas as pl
from jax.experimental.pallas import tpu as pltpu

_LANE = 128
_SUBLANE = 8
_PREFERRED_LANE_WIDTHS = (2048, 1024, 512, 256, 128)


def _device_kind():
    try:
        return jax.devices()[0].device_kind.lower()
    except Exception:
        return ""


def _is_v7x():
    kind = _device_kind()
    return ("v7" in kind) or ("7x" in kind)


def _block_byte_budget():
    # v7x HBM (~3.2 TB/s) drains blocks ~2.3x faster than v6e, so the fixed
    # ~0.35us per-grid-step overhead matters more -> use bigger blocks there.
    return (4 << 20) if _is_v7x() else (2 << 20)


def _choose_block(m, n, itemsize, target_bytes):
    """Lane-dense, (8,128)-legal block near the VMEM byte budget.

    On the Pallas path `n` is always a multiple of 128 and <= 2048, so the
    block spans the full row: each HBM<->VMEM DMA is one contiguous linear
    descriptor and the column grid axis collapses to 1.
    """
    bc = n
    row_bytes = max(1, bc * itemsize)
    br = (target_bytes // row_bytes) // _SUBLANE * _SUBLANE
    br = max(_SUBLANE, br)
    if br >= m:
        br = m  # full dim is always a legal block extent
    return br, bc


def _dimension_semantics(grid):
    core_parallel = getattr(pltpu, "CORE_PARALLEL", None)
    plain_parallel = getattr(pltpu, "PARALLEL", "parallel")
    if core_parallel is not None and _is_v7x() and grid[0] >= 2:
        # Only CORE_PARALLEL actually splits work across v7x's two TensorCores.
        return (core_parallel, plain_parallel)
    return ("parallel", "parallel")


def _fake_quant_kernel(params_ref, w_ref, o_ref):
    # params (SMEM f32[4]): [inv_scale, scale, qlo, qhi].  zero_point is folded
    # into the clip bounds: clamp(r+zp,qmin,qmax)-zp == clamp(r, qmin-zp, qmax-zp).
    inv_scale = params_ref[0]
    scale = params_ref[1]
    qlo = params_ref[2]
    qhi = params_ref[3]
    wf = w_ref[...].astype(jnp.float32)
    q = jnp.clip(jnp.round(wf * inv_scale), qlo, qhi)
    o_ref[...] = (q * scale).astype(o_ref.dtype)


def _pallas_fake_quant_2d(w2d, qparams):
    m, n = w2d.shape
    br, bc = _choose_block(m, n, jnp.dtype(w2d.dtype).itemsize, _block_byte_budget())
    grid = (pl.cdiv(m, br), pl.cdiv(n, bc))
    return pl.pallas_call(
        _fake_quant_kernel,
        out_shape=jax.ShapeDtypeStruct((m, n), w2d.dtype),
        grid_spec=pltpu.PrefetchScalarGridSpec(
            num_scalar_prefetch=0,
            grid=grid,
            in_specs=[
                pl.BlockSpec(memory_space=pltpu.MemorySpace.SMEM),  # qparams f32[4]
                pl.BlockSpec((br, bc), lambda i, j: (i, j)),
            ],
            out_specs=pl.BlockSpec((br, bc), lambda i, j: (i, j)),
        ),
        compiler_params=pltpu.CompilerParams(
            dimension_semantics=_dimension_semantics(grid),
            vmem_limit_bytes=32 * 1024 * 1024,
        ),
    )(qparams, w2d)


def _xla_fake_quant(w, qparams):
    # Fallback for tiny / non-128-divisible tensors (per perf review): the
    # pallas_call launch + masked partial-lane stores would dominate, so let
    # XLA fuse the elementwise math.
    inv_scale, scale, qlo, qhi = qparams[0], qparams[1], qparams[2], qparams[3]
    wf = w.astype(jnp.float32)
    q = jnp.clip(jnp.round(wf * inv_scale), qlo, qhi)
    return (q * scale).astype(w.dtype)


def _fake_quant(w, qparams):
    total = w.size
    for c in _PREFERRED_LANE_WIDTHS:
        if total >= c and total % c == 0:
            w2d = w.reshape(total // c, c)  # pure view: row-major flatten/refold
            out2d = _pallas_fake_quant_2d(w2d, qparams)
            return out2d.reshape(w.shape)
    return _xla_fake_quant(w, qparams)


# ---- STEQuant.apply equivalent: fake-quant forward, identity backward ----
@jax.custom_vjp
def ste_quant(weights, qparams):
    """qparams: f32[4] = [inv_scale, scale, qmin - zero_point, qmax - zero_point]."""
    return _fake_quant(weights, qparams)


def _ste_fwd(weights, qparams):
    return _fake_quant(weights, qparams), None


def _ste_bwd(_residuals, g):
    # Straight-through: grad flows unchanged to `weights`; none to quant params.
    return (g, jnp.zeros((4,), jnp.float32))


ste_quant.defvjp(_ste_fwd, _ste_bwd)


class STEParam:
    """JAX/Pallas equivalent of the PyTorch STEParam parametrization module."""

    def __init__(self, device: str = "tpu"):
        self.device = device  # kept for API parity; backend is whatever JAX uses
        self.quant_params = None
        self.quant_config = None

    def set_quant_params(self, quant_params: dict):
        self.quant_params = quant_params

    def set_quant_config(self, quant_config: dict):
        self.quant_config = quant_config

    def __call__(self, weights):
        num_bits = self.quant_config.get("num_bits", 8)
        signed = self.quant_config.get("signed", True)
        if signed:
            qmin = -(2 ** (num_bits - 1))
            qmax = 2 ** (num_bits - 1) - 1
        else:
            qmin = 0
            qmax = 2 ** num_bits - 1
        scale = jnp.asarray(self.quant_params["scale"], jnp.float32)
        zero_point = jnp.asarray(self.quant_params["zero_point"], jnp.float32)
        # Traced scalars (not closure constants): changing scale / zero_point
        # between calls never retraces or recompiles the pallas_call.
        qparams = jnp.stack(
            [1.0 / scale, scale, qmin - zero_point, qmax - zero_point]
        ).astype(jnp.float32)
        return ste_quant(weights, qparams)


def _reference_fake_quant(w, scale, zp, qmin, qmax):
    q = jnp.clip(jnp.round(w / scale) + zp, qmin, qmax)
    return (q - zp) * scale


def _check_close(out, ref, scale):
    # inv_scale multiply vs. the reference divide can flip rounding on exact
    # half-step boundaries (1-ulp effect): allow a rare one-step difference.
    diff = jnp.abs(out - ref)
    assert float(jnp.max(diff)) <= scale + 1e-6, "fake-quant differs by > 1 step"
    assert float(jnp.mean((diff > 1e-5).astype(jnp.float32))) < 1e-3, \
        "too many boundary mismatches vs reference"


if __name__ == "__main__":
    key = jax.random.PRNGKey(0)
    k_lin, k_conv = jax.random.split(key)

    # linear-layer weight: (out_features=32, in_features=128) -> lane-dense Pallas path
    weights = jax.random.normal(k_lin, (32, 128), dtype=jnp.float32) * 0.5

    mod = STEParam(device="tpu")
    mod.set_quant_params({"scale": 0.02, "zero_point": 0.0})
    mod.set_quant_config({"num_bits": 8, "signed": True})

    out = jax.block_until_ready(mod(weights))
    ref = _reference_fake_quant(weights, 0.02, 0.0, -128.0, 127.0)
    assert out.shape == weights.shape and out.dtype == weights.dtype
    _check_close(out, ref, 0.02)

    # straight-through backward: grad wrt weights is identity
    g = jax.block_until_ready(jax.grad(lambda w: jnp.sum(mod(w)))(weights))
    assert jnp.allclose(g, jnp.ones_like(weights)), "STE backward should be identity"

    # conv-style weight (O=8, I=4, kH=3, kW=3): 288 elements, not 128-divisible
    # -> exercises the XLA fallback; unsigned 4-bit with nonzero zero-point.
    conv_w = jax.random.normal(k_conv, (8, 4, 3, 3), dtype=jnp.float32) * 0.2
    mod2 = STEParam(device="tpu")
    mod2.set_quant_params({"scale": 0.05, "zero_point": 7.0})
    mod2.set_quant_config({"num_bits": 4, "signed": False})
    out2 = jax.block_until_ready(mod2(conv_w))
    ref2 = _reference_fake_quant(conv_w, 0.05, 7.0, 0.0, 15.0)
    assert out2.shape == conv_w.shape and out2.dtype == conv_w.dtype
    _check_close(out2, ref2, 0.05)

    print("KERNEL_OK")
</pallas_src>

<mosaic_0001>
module attributes {stable_mosaic.version = 11 : i64} {
  func.func @_fake_quant_kernel(%arg0: i32, %arg1: i32, %arg2: memref<4xf32, #tpu.memory_space<smem>>, %arg3: memref<2x2048xf32, #tpu.memory_space<vmem>>, %arg4: memref<2x2048xf32, #tpu.memory_space<vmem>>) attributes {dimension_semantics = [#tpu.dimension_semantics<parallel>, #tpu.dimension_semantics<parallel>], iteration_bounds = array<i64: 1, 1>, scalar_prefetch = 0 : i64, scratch_operands = 0 : i64, tpu.core_type = #tpu.core_type<tc>, window_params = [{transform_indices = @transform_0, window_bounds = array<i64: 4>}, {transform_indices = @transform_1, window_bounds = array<i64: 2, 2048>}, {transform_indices = @transform_2, window_bounds = array<i64: 2, 2048>}]} {
    %c0 = arith.constant 0 : index
    %0 = memref.load %arg2[%c0] : memref<4xf32, #tpu.memory_space<smem>>
    %c1 = arith.constant 1 : index
    %1 = memref.load %arg2[%c1] : memref<4xf32, #tpu.memory_space<smem>>
    %c2 = arith.constant 2 : index
    %2 = memref.load %arg2[%c2] : memref<4xf32, #tpu.memory_space<smem>>
    %c3 = arith.constant 3 : index
    %3 = memref.load %arg2[%c3] : memref<4xf32, #tpu.memory_space<smem>>
    %c0_0 = arith.constant 0 : index
    %c0_1 = arith.constant 0 : index
    %4 = vector.load %arg3[%c0_0, %c0_1] : memref<2x2048xf32, #tpu.memory_space<vmem>>, vector<2x2048xf32>
    %5 = vector.broadcast %0 : f32 to vector<2x2048xf32>
    %6 = arith.mulf %4, %5 : vector<2x2048xf32>
    %7 = math.roundeven %6 : vector<2x2048xf32>
    %8 = vector.broadcast %2 : f32 to vector<2x2048xf32>
    %9 = arith.maximumf %8, %7 : vector<2x2048xf32>
    %10 = vector.broadcast %3 : f32 to vector<2x2048xf32>
    %11 = arith.minimumf %10, %9 : vector<2x2048xf32>
    %12 = vector.broadcast %1 : f32 to vector<2x2048xf32>
    %13 = arith.mulf %11, %12 : vector<2x2048xf32>
    %c0_2 = arith.constant 0 : index
    %c0_3 = arith.constant 0 : index
    %14 = vector.load %arg4[%c0_2, %c0_3] : memref<2x2048xf32, #tpu.memory_space<vmem>>, vector<2x2048xf32>
    tpu.vector_store %arg4[%c0_2, %c0_3], %13 {strides = array<i32>} : memref<2x2048xf32, #tpu.memory_space<vmem>>, vector<2x2048xf32>,
    return
  }
  func.func @transform_0(%arg0: i32, %arg1: i32) -> i32 {
    %c0_i32 = arith.constant 0 : i32
    %c0_i32_0 = arith.constant 0 : i32
    return %c0_i32 : i32
  }
  func.func @transform_1(%arg0: i32, %arg1: i32) -> (i32, i32) {
    %c0_i32 = arith.constant 0 : i32
    return %arg0, %arg1 : i32, i32
  }
  func.func @transform_2(%arg0: i32, %arg1: i32) -> (i32, i32) {
    %c0_i32 = arith.constant 0 : i32
    return %arg0, %arg1 : i32, i32
  }
}

</mosaic_0001>

<bundles_post_ra>
// kernel: tpu_custom_call.1
= control target key start
LH: loop header
LB: loop body
LE: loop exit
PB: predicated region body
PF: predicated region fallthrough
CT: control target
= control target key end

     0   :  { %7 = vsyncpa [#allocation5], 0  ;;  %s211_s0 = inlined_call_operand.hbm [shape: f32[4], index: 0, kind: input, shape index: {}]   ;;  %s212_s1 = inlined_call_operand.hbm [shape: f32[2,2048], index: 1, kind: input, shape index: {}]   ;;  %s213_s2 = inlined_call_operand.hbm [shape: f32[2,2048], index: 2, kind: output, shape index: {}]  }
   0x1   :  { %8 = vsyncpa [#allocation3], 0 }
   0x2   :  { %9 = vsyncpa [#allocation4], 0  ;;  %s97_s11 = scalar_lea.hbm %s211_s0, 16 }
   0x3   :  { %p98_p0 = scmp.ne.s32.totalorder %s211_s0, %s97_s11  ;;  %p101_p1 = scmp.lt.u32.totalorder %s97_s11, %s211_s0 }
   0x5   :  { %p103_p2 = pnand %p101_p1, %p98_p0 }
   0x7   :  { %106 = shalt.err (!%p103_p2)
}
   0x8   :  { %s157_s16 = smov [#allocation2]   ;;  %s158_s19 = smov [#allocation6]  }
   0x9   :  { %17 = dma.hbm_to_smem %s211_s0, 16, %s157_s16, [#allocation5]  }
   0xa   :  { %s24_s20 = sshll.u32 %s158_s19, 4  ;;  %s107_s23 = scalar_lea.hbm %s212_s1, 512  ;;  %s25_s20 = int_to_ptr.vmem [resolvable:$true] %s24_s20 }
   0xb   :  { %p108_p3 = scmp.ne.s32.totalorder %s212_s1, %s107_s23  ;;  %p111_p4 = scmp.lt.u32.totalorder %s107_s23, %s212_s1 }
   0xd   :  { %p113_p5 = pnand %p111_p4, %p108_p3 }
   0xf   :  { %116 = shalt.err (!%p113_p5)
}
  0x10   :  { %s117_s28 = scalar_lea.vmem %s25_s20, 512  ;;  %p122_p7 = scmp.lt.s32.totalorder %s25_s20, %s25_s20 }
  0x11   :  { %p118_p6 = scmp.ne.s32.totalorder %s25_s20, %s117_s28  ;;  %p123_p8 = scmp.lt.s32.totalorder %s117_s28, %s117_s28 }
  0x13   :  { %p124_p9 = por %p123_p8, %p122_p7 }
  0x15   :  { %p125_p10 = pnand %p124_p9, %p118_p6 }
  0x17   :  { %128 = shalt.err (!%p125_p10)
}
  0x18   :  { %27 = dma.hbm_to_vmem [thread:$0]  %s212_s1, 512, %s25_s20, [#allocation3]  }
  0x19   :  { %151 = dma.done.wait [#allocation5], 16  }
  0x1a   :  { %152 = vsyncadd [#allocation5], 4294967280 }
  0x1b   :  { %153 = dma.done.wait [#allocation3], 512  }
  0x1c   :  { %154 = vsyncadd [#allocation3], 4294966784 }
  0x1d   :  { %34 = sfence }
  0x1e   :  { %s35_s30 = sld [smem:[#allocation2]]  ;;  %s88_s3 = sld [smem:[#allocation2 + $0x2]]  ;;  %v39_v0 = vld [vmem:[#allocation6] sm:$0xff]  ;;  %v40_v1 = vld [vmem:[#allocation6 + $0x8] sm:$0xff]  ;;  %v41_v2 = vld [vmem:[#allocation6 + $0x10] sm:$0xff] }
  0x1f   :  { %s89_s4 = sld [smem:[#allocation2 + $0x3]]  ;;  %s87_s5 = sld [smem:[#allocation2 + $0x1]]  ;;  %v42_v3 = vld [vmem:[#allocation6 + $0x18] sm:$0xff] }
  0x20   :  { %s159_s1 = smov [#allocation7]  }
  0x21   :  { %s77_s6 = sshll.u32 %s159_s1, 4  ;;  %s78_s6 = int_to_ptr.vmem [resolvable:$true] %s77_s6 }
  0x22   :  { %s129_s7 = scalar_lea.vmem %s78_s6, 512  ;;  %p134_p12 = scmp.lt.s32.totalorder %s78_s6, %s78_s6 }
  0x23   :  { %p130_p11 = scmp.ne.s32.totalorder %s78_s6, %s129_s7  ;;  %p135_p13 = scmp.lt.s32.totalorder %s129_s7, %s129_s7 }
  0x24   :  { %v43_v4 = vstv %s35_s30  ;;  %v52_v7 = vstv %s88_s3 }
  0x25   :  { %v44_v5 = vmul.f32 %v43_v4, %v39_v0  ;;  %v45_v6 = vmul.f32 %v43_v4, %v40_v1  ;;  %v46_v8 = vmul.f32 %v43_v4, %v41_v2  ;;  %v47_v9 = vmul.f32 %v43_v4, %v42_v3  ;;  %p136_p0 = por %p135_p13, %p134_p12 }
  0x26   :  { %v57_v12 = vstv %s89_s4  ;;  %v62_v17 = vstv %s87_s5 }
  0x27   :  { %v90_v10 = vround.rtne.f32 %v44_v5  ;;  %v91_v11 = vround.rtne.f32 %v45_v6  ;;  %v92_v13 = vround.rtne.f32 %v46_v8  ;;  %v93_v14 = vround.rtne.f32 %v47_v9  ;;  %p137_p1 = pnand %p136_p0, %p130_p11 }
  0x29   :  { %v53_v15 = vmax.f32 %v52_v7, %v90_v10  ;;  %v54_v16 = vmax.f32 %v52_v7, %v91_v11  ;;  %v55_v18 = vmax.f32 %v52_v7, %v92_v13  ;;  %v56_v19 = vmax.f32 %v52_v7, %v93_v14 }
  0x2b   :  { %v58_v20 = vmin.f32 %v57_v12, %v53_v15  ;;  %v59_v21 = vmin.f32 %v57_v12, %v54_v16  ;;  %v60_v22 = vmin.f32 %v57_v12, %v55_v18  ;;  %v61_v23 = vmin.f32 %v57_v12, %v56_v19 }
  0x2d   :  { %v63_v24 = vmul.f32 %v62_v17, %v58_v20  ;;  %v64_v25 = vmul.f32 %v62_v17, %v59_v21  ;;  %v65_v26 = vmul.f32 %v62_v17, %v60_v22  ;;  %v66_v27 = vmul.f32 %v62_v17, %v61_v23 }
  0x2f   :  { %67 = vst [vmem:[#allocation7] sm:$0xff] %v63_v24  ;;  %68 = vst [vmem:[#allocation7 + $0x8] sm:$0xff] %v64_v25 }
  0x30   :  { %69 = vst [vmem:[#allocation7 + $0x10] sm:$0xff] %v65_v26  ;;  %70 = vst [vmem:[#allocation7 + $0x18] sm:$0xff] %v66_v27 }
  0x31   :  { %140 = shalt.err (!%p137_p1)
}
  0x32   :  { %s141_s10 = scalar_lea.hbm %s213_s2, 512 }
  0x33   :  { %p142_p2 = scmp.ne.s32.totalorder %s213_s2, %s141_s10  ;;  %p145_p3 = scmp.lt.u32.totalorder %s141_s10, %s213_s2 }
  0x35   :  { %p147_p4 = pnand %p145_p3, %p142_p2 }
  0x37   :  { %150 = shalt.err (!%p147_p4)
}
  0x38   :  { %80 = dma.vmem_to_hbm [thread:$0]  %s78_s6, 512, %s213_s2, [#allocation4]  }
  0x39   :  { %155 = dma.done.wait [#allocation4], 512  }
  0x3a   :  { %156 = vsyncadd [#allocation4], 4294966784 }
  0x3b   :  { %84 = vsyncpa [#allocation3], 1 }
  0x3c   :  { %85 = vsyncpa [#allocation4], 1 }
  0x3d   :  { %86 = vsyncpa [#allocation5], 1 }

</bundles_post_ra>
